<compile_context>
chip_gen: v6e
topology: v6e:2x2x1
jax: 0.10.0
libtpu: 0.0.40
codegen_flags: <defaults>
</compile_context>

<pallas_src>
import functools

import jax
import jax.numpy as jnp
from jax.experimental import pallas as pl
from jax.experimental.pallas import tpu as pltpu


def _block_diag(block, copies):
    """copies x copies block-diagonal matrix built from `block` (wrapper glue)."""
    r, c = block.shape
    out = jnp.zeros((copies * r, copies * c), block.dtype)
    for j in range(copies):
        out = out.at[j * r:(j + 1) * r, j * c:(j + 1) * c].set(block)
    return out


def _make_kernel(tm_p, chunk):
    """Kernel over one (tm_p, P*D) f32 x-tile, chunked so h never spills."""
    n_full = tm_p // chunk
    rem = tm_p - n_full * chunk

    def kernel(x_ref, w1_ref, b1_ref, w2_ref, b2_ref, o_ref):
        # x_ref:  (tm_p, P*D)  f32   P original rows packed along the lane axis
        # w1_ref: (P*D,  P*H)  bf16  block-diagonal fc1 weight (VMEM-resident)
        # b1_ref: (1,    P*H)  f32   fc1 bias tiled P times     (VMEM-resident)
        # w2_ref: (P*H,  P)    bf16  block-diagonal fc2 weight  (VMEM-resident)
        # b2_ref: (1, 1)       f32   fc2 bias (SMEM scalar)
        # o_ref:  (tm_p, P)    f32   sigmoid scores, row r_p,col j = row r_p*P+j
        def do_chunk(off, size):
            # Cast f32 -> bf16 on the VPU right before the MXU; x stays f32 in
            # HBM/VMEM so it is read from HBM exactly once.
            xb = x_ref[pl.ds(off, size), :].astype(jnp.bfloat16)        # (size, P*D)
            h = jnp.dot(xb, w1_ref[...],
                        preferred_element_type=jnp.float32)             # (size, P*H)
            h = jnp.maximum(h + b1_ref[...], 0.0)                       # f32 bias+ReLU
            # Natural MXU orientation: (size, P*H) @ (P*H, P) -> (size, P).
            # No relayout of h, no result transpose.
            s = jnp.dot(h.astype(jnp.bfloat16), w2_ref[...],
                        preferred_element_type=jnp.float32)
            o_ref[pl.ds(off, size), :] = jax.nn.sigmoid(s + b2_ref[0, 0])

        if n_full == 1:
            do_chunk(0, chunk)
        elif n_full > 1:
            def body(i, carry):
                do_chunk(pl.multiple_of(i * chunk, chunk), chunk)
                return carry
            jax.lax.fori_loop(0, n_full, body, 0, unroll=True)
        if rem > 0:
            do_chunk(n_full * chunk, rem)

    return kernel


@functools.partial(jax.jit, static_argnames=("pack", "max_packed_rows", "chunk"))
def edge_scorer(x, w1, b1, w2, b2, *, pack=4, max_packed_rows=4096, chunk=256):
    """fc1 -> ReLU -> fc2 -> sigmoid.

    x: (..., D) float; w1: (D, H); b1: (H,); w2: (H, 1); b2: (1,) / scalar.
    Returns (..., 1) float32.
    """
    *lead, D = x.shape
    H = w1.shape[-1]
    P = int(pack)

    x2 = x.reshape(-1, D)                      # metadata-only
    N = x2.shape[0]

    # Lane-packing (N, D) -> (N/P, P*D).  When N % P == 0 this is a pure
    # metadata reshape (bitcast under jit) -> no extra HBM pass over x.
    # Ragged N still needs <= P-1 pad rows (one extra pass, only in that case).
    pad_rows = (-N) % P
    if pad_rows:
        x2 = jnp.pad(x2, ((0, pad_rows), (0, 0)))
    N_p = (N + pad_rows) // P
    x_packed = x2.reshape(N_p, P * D)          # stays f32 (cast happens in-kernel)

    # Row tiling: one full-array block for small/medium N, else 4096 packed rows
    # (16K original rows) per grid step.  The ragged last grid block is handled
    # by Pallas block clamping; its garbage scores are discarded below.
    tm_p = N_p if N_p <= max_packed_rows else max_packed_rows
    grid_p = pl.cdiv(N_p, tm_p)
    c = min(chunk, tm_p)

    # Block-diagonal weights so the packed layout is two plain wide matmuls.
    w1_bd = _block_diag(w1, P).astype(jnp.bfloat16)                        # (P*D, P*H)
    w2_bd = _block_diag(jnp.reshape(w2, (H, 1)), P).astype(jnp.bfloat16)   # (P*H, P)
    b1_bd = jnp.tile(jnp.reshape(b1, (1, H)).astype(jnp.float32), (1, P))  # (1,   P*H)
    b2_2d = jnp.reshape(b2, (1, 1)).astype(jnp.float32)                    # (1, 1) SMEM

    out = pl.pallas_call(
        _make_kernel(tm_p, c),
        out_shape=jax.ShapeDtypeStruct((grid_p * tm_p, P), jnp.float32),
        grid_spec=pltpu.PrefetchScalarGridSpec(
            num_scalar_prefetch=0,
            grid=(grid_p,),
            in_specs=[
                pl.BlockSpec((tm_p, P * D), lambda i: (i, 0)),     # x tile (f32, pipelined)
                # Constant index maps: Pallas keeps these resident, no re-DMA.
                pl.BlockSpec((P * D, P * H), lambda i: (0, 0)),    # W1 block-diag
                pl.BlockSpec((1, P * H), lambda i: (0, 0)),        # b1 tiled
                pl.BlockSpec((P * H, P), lambda i: (0, 0)),        # W2 block-diag
                pl.BlockSpec(memory_space=pltpu.MemorySpace.SMEM), # b2 scalar
            ],
            out_specs=pl.BlockSpec((tm_p, P), lambda i: (i, 0)),
        ),
        compiler_params=pltpu.CompilerParams(
            dimension_semantics=("parallel",),
        ),
    )(x_packed, w1_bd, b1_bd, w2_bd, b2_2d)

    # out[r_p, j] = score of original row r_p*P + j  ->  row-major flatten is
    # already the original order; drop padded / clamped-block tail rows.
    scores = out.reshape(-1)[:N]
    return scores.reshape(*lead, 1)


def reference(x, w1, b1, w2, b2, *, emulate_bf16=False):
    f32 = jnp.float32
    if emulate_bf16:
        x = x.astype(jnp.bfloat16).astype(f32)
        w1 = w1.astype(jnp.bfloat16).astype(f32)
        w2 = w2.astype(jnp.bfloat16).astype(f32)
    h = jnp.maximum(x @ w1 + jnp.reshape(b1, (1, -1)), 0.0)
    if emulate_bf16:
        h = h.astype(jnp.bfloat16).astype(f32)
    return jax.nn.sigmoid(h @ jnp.reshape(w2, (-1, 1)) + jnp.reshape(b2, (1, 1)))


if __name__ == "__main__":
    # Small shapes consistent with the module's forward:
    #   x: (batch=2, seq=8, input_dim=32) -> output (2, 8, 1)
    batch, seq, input_dim, hidden_dim = 2, 8, 32, 64

    key = jax.random.PRNGKey(0)
    kx, kw1, kb1, kw2, kb2, kx2, kx3 = jax.random.split(key, 7)

    x = jax.random.normal(kx, (batch, seq, input_dim), dtype=jnp.float32)

    # Deterministic parameter init (uniform, PyTorch-Linear-style bound).
    bound1 = 1.0 / jnp.sqrt(input_dim)
    bound2 = 1.0 / jnp.sqrt(hidden_dim)
    w1 = jax.random.uniform(kw1, (input_dim, hidden_dim), jnp.float32, -bound1, bound1)
    b1 = jax.random.uniform(kb1, (hidden_dim,), jnp.float32, -bound1, bound1)
    w2 = jax.random.uniform(kw2, (hidden_dim, 1), jnp.float32, -bound2, bound2)
    b2 = jax.random.uniform(kb2, (1,), jnp.float32, -bound2, bound2)

    out = edge_scorer(x, w1, b1, w2, b2)
    jax.block_until_ready(out)
    assert out.shape == (batch, seq, 1)
    assert jnp.allclose(out, reference(x, w1, b1, w2, b2, emulate_bf16=True),
                        atol=2e-3, rtol=0)
    assert jnp.allclose(out, reference(x, w1, b1, w2, b2, emulate_bf16=False),
                        atol=2e-2, rtol=0)

    # Ragged N (3*413 = 1239, not a multiple of 4): tiny-pad path + remainder chunk.
    x_big = jax.random.normal(kx2, (3, 413, input_dim), dtype=jnp.float32)
    out_big = edge_scorer(x_big, w1, b1, w2, b2)
    jax.block_until_ready(out_big)
    assert out_big.shape == (3, 413, 1)
    assert jnp.allclose(out_big, reference(x_big, w1, b1, w2, b2, emulate_bf16=True),
                        atol=2e-3, rtol=0)

    # Large aligned N (5*4000 = 20000 rows -> 5000 packed rows): zero-copy
    # reshape, multi-block "parallel" grid with a clamped partial last block,
    # and the 16x-unrolled chunk loop.
    x_huge = jax.random.normal(kx3, (5, 4000, input_dim), dtype=jnp.float32)
    out_huge = edge_scorer(x_huge, w1, b1, w2, b2)
    jax.block_until_ready(out_huge)
    assert out_huge.shape == (5, 4000, 1)
    assert jnp.allclose(out_huge, reference(x_huge, w1, b1, w2, b2, emulate_bf16=True),
                        atol=2e-3, rtol=0)

    print("KERNEL_OK")
</pallas_src>

<mosaic_0001>
module attributes {stable_mosaic.version = 11 : i64} {
  func.func @kernel(%arg0: i32, %arg1: memref<4x128xf32, #tpu.memory_space<vmem>>, %arg2: memref<128x256xbf16, #tpu.memory_space<vmem>>, %arg3: memref<1x256xf32, #tpu.memory_space<vmem>>, %arg4: memref<256x4xbf16, #tpu.memory_space<vmem>>, %arg5: memref<1x1xf32, #tpu.memory_space<smem>>, %arg6: memref<4x4xf32, #tpu.memory_space<vmem>>) attributes {dimension_semantics = [#tpu.dimension_semantics<parallel>], iteration_bounds = array<i64: 1>, scalar_prefetch = 0 : i64, scratch_operands = 0 : i64, tpu.core_type = #tpu.core_type<tc>, window_params = [{transform_indices = @transform_0, window_bounds = array<i64: 4, 128>}, {pipeline_mode = #tpu.pipeline_mode<synchronous>, transform_indices = @transform_1, window_bounds = array<i64: 128, 256>}, {pipeline_mode = #tpu.pipeline_mode<synchronous>, transform_indices = @transform_2, window_bounds = array<i64: 1, 256>}, {pipeline_mode = #tpu.pipeline_mode<synchronous>, transform_indices = @transform_3, window_bounds = array<i64: 256, 4>}, {transform_indices = @transform_4, window_bounds = array<i64: 1, 1>}, {transform_indices = @transform_5, window_bounds = array<i64: 4, 4>}]} {
    %c0 = arith.constant 0 : index
    %c0_0 = arith.constant 0 : index
    %0 = vector.load %arg1[%c0, %c0_0] : memref<4x128xf32, #tpu.memory_space<vmem>>, vector<4x128xf32>
    %1 = arith.truncf %0 : vector<4x128xf32> to vector<4x128xbf16>
    %c0_1 = arith.constant 0 : index
    %c0_2 = arith.constant 0 : index
    %2 = vector.load %arg2[%c0_1, %c0_2] : memref<128x256xbf16, #tpu.memory_space<vmem>>, vector<128x256xbf16>
    %cst = arith.constant dense<0.000000e+00> : vector<4x256xf32>
    %3 = tpu.matmul %1, %2, %cst {dimension_numbers = #tpu.dot_dimension_numbers<[1], [0], [0], [1], [0, 0, 1, 1], [], []>} : vector<4x128xbf16>, vector<128x256xbf16>, vector<4x256xf32> -> vector<4x256xf32>
    %c0_3 = arith.constant 0 : index
    %c0_4 = arith.constant 0 : index
    %4 = vector.load %arg3[%c0_3, %c0_4] : memref<1x256xf32, #tpu.memory_space<vmem>>, vector<1x256xf32>
    %5 = vector.broadcast %4 : vector<1x256xf32> to vector<4x256xf32>
    %6 = arith.addf %3, %5 : vector<4x256xf32>
    %cst_5 = arith.constant 0.000000e+00 : f32
    %7 = vector.broadcast %cst_5 : f32 to vector<4x256xf32>
    %8 = arith.maximumf %6, %7 : vector<4x256xf32>
    %9 = arith.truncf %8 : vector<4x256xf32> to vector<4x256xbf16>
    %c0_6 = arith.constant 0 : index
    %c0_7 = arith.constant 0 : index
    %10 = vector.load %arg4[%c0_6, %c0_7] : memref<256x4xbf16, #tpu.memory_space<vmem>>, vector<256x4xbf16>
    %cst_8 = arith.constant dense<0.000000e+00> : vector<4x4xf32>
    %11 = tpu.matmul %9, %10, %cst_8 {dimension_numbers = #tpu.dot_dimension_numbers<[1], [0], [0], [1], [0, 0, 1, 1], [], []>} : vector<4x256xbf16>, vector<256x4xbf16>, vector<4x4xf32> -> vector<4x4xf32>
    %c0_9 = arith.constant 0 : index
    %c0_10 = arith.constant 0 : index
    %12 = memref.load %arg5[%c0_9, %c0_10] : memref<1x1xf32, #tpu.memory_space<smem>>
    %13 = vector.broadcast %12 : f32 to vector<4x4xf32>
    %14 = arith.addf %11, %13 : vector<4x4xf32>
    %15 = arith.negf %14 : vector<4x4xf32>
    %16 = math.exp %15 : vector<4x4xf32>
    %cst_11 = arith.constant 1.000000e+00 : f32
    %17 = vector.broadcast %cst_11 : f32 to vector<4x4xf32>
    %18 = arith.addf %17, %16 : vector<4x4xf32>
    %19 = arith.divf %17, %18 : vector<4x4xf32>
    %c0_12 = arith.constant 0 : index
    %c0_13 = arith.constant 0 : index
    %20 = vector.load %arg6[%c0_12, %c0_13] : memref<4x4xf32, #tpu.memory_space<vmem>>, vector<4x4xf32>
    tpu.vector_store %arg6[%c0_12, %c0_13], %19 {strides = array<i32>} : memref<4x4xf32, #tpu.memory_space<vmem>>, vector<4x4xf32>,
    return
  }
  func.func @transform_0(%arg0: i32) -> (i32, i32) {
    %c0_i32 = arith.constant 0 : i32
    %c0_i32_0 = arith.constant 0 : i32
    return %arg0, %c0_i32 : i32, i32
  }
  func.func @transform_1(%arg0: i32) -> (i32, i32) {
    %c0_i32 = arith.constant 0 : i32
    %c0_i32_0 = arith.constant 0 : i32
    %c0_i32_1 = arith.constant 0 : i32
    return %c0_i32, %c0_i32_0 : i32, i32
  }
  func.func @transform_2(%arg0: i32) -> (i32, i32) {
    %c0_i32 = arith.constant 0 : i32
    %c0_i32_0 = arith.constant 0 : i32
    %c0_i32_1 = arith.constant 0 : i32
    return %c0_i32, %c0_i32_0 : i32, i32
  }
  func.func @transform_3(%arg0: i32) -> (i32, i32) {
    %c0_i32 = arith.constant 0 : i32
    %c0_i32_0 = arith.constant 0 : i32
    %c0_i32_1 = arith.constant 0 : i32
    return %c0_i32, %c0_i32_0 : i32, i32
  }
  func.func @transform_4(%arg0: i32) -> (i32, i32) {
    %c0_i32 = arith.constant 0 : i32
    %c0_i32_0 = arith.constant 0 : i32
    %c0_i32_1 = arith.constant 0 : i32
    return %c0_i32, %c0_i32_0 : i32, i32
  }
  func.func @transform_5(%arg0: i32) -> (i32, i32) {
    %c0_i32 = arith.constant 0 : i32
    %c0_i32_0 = arith.constant 0 : i32
    return %arg0, %c0_i32 : i32, i32
  }
}

</mosaic_0001>

<bundles_post_ra>
// kernel: edge_scorer.1
= control target key start
LH: loop header
LB: loop body
LE: loop exit
PB: predicated region body
PF: predicated region fallthrough
CT: control target
= control target key end

     0   :  { %v459_v1 = vmov 0   ;;  %v42_v35 = vlaneseq  ;;  %vm353_vm0 = vcmask 27648   ;;  %s598_s1 = inlined_call_operand.vmem [shape: bf16[128,256], index: 1, kind: input, shape index: {}]   ;;  %s599_s3 = inlined_call_operand.vmem [shape: bf16[256,4], index: 3, kind: input, shape index: {}]   ;;  %s600_s0 = inlined_call_operand.vmem [shape: f32[4,128], index: 0, kind: input, shape index: {}]   ;;  %s601_s2 = inlined_call_operand.vmem [shape: f32[1,256], index: 2, kind: input, shape index: {}]   ;;  %s602_s4 = inlined_call_operand.<no memory space> [shape: f32[1,1], index: 4, kind: input, shape index: {}]   ;;  %s603_s5 = inlined_call_operand.vmem [shape: f32[4,4], index: 5, kind: output, shape index: {}]  }
   0x1   :  { %v415_v0 = vld [vmem:[%s598_s1 + $0x74] ss:$8 sps:$4 sm:$0xff]   ;;  %164 = vmatprep.mubr.bf16.mxu0 %v459_v1  ;;  %v417_v2 = vld [vmem:[%s598_s1 + $0x70] ss:$8 sps:$4 sm:$0xff]   ;;  %v418_v3 = vld [vmem:[%s598_s1 + $0x64] ss:$8 sps:$4 sm:$0xff]   ;;  %v210_v53 = vstv %s602_s4 }
   0x2   :  { %132 = vmatprep.subr.bf16.mxu0 %v415_v0  ;;  %v420_v4 = vld [vmem:[%s598_s1 + $0x60] ss:$8 sps:$4 sm:$0xff]   ;;  %v421_v5 = vld [vmem:[%s598_s1 + $0x54] ss:$8 sps:$4 sm:$0xff]   ;;  %v423_v6 = vld [vmem:[%s598_s1 + $0x50] ss:$8 sps:$4 sm:$0xff]  }
   0x3   :  { %133 = vmatpush1.bf16.msra.mxu0 %v417_v2  ;;  %v424_v7 = vld [vmem:[%s598_s1 + $0x44] ss:$8 sps:$4 sm:$0xff]   ;;  %v426_v8 = vld [vmem:[%s598_s1 + $0x40] ss:$8 sps:$4 sm:$0xff]   ;;  %v427_v9 = vld [vmem:[%s598_s1 + $0x34] ss:$8 sps:$4 sm:$0xff]  }
   0x4   :  { %134 = vmatprep.subr.bf16.mxu0 %v418_v3  ;;  %v439_v10 = vld [vmem:[%s599_s3 + $0x78] sm:$0xff]   ;;  %v441_v13 = vld [vmem:[%s599_s3 + $0x70] sm:$0xff]   ;;  %v443_v15 = vld [vmem:[%s599_s3 + $0x68] sm:$0xff]   ;;  %v43_v36 = vshrl.u32 %v42_v35, 7 }
   0x5   :  { %v440_v11 = vld [vmem:[%s599_s3 + $0x38] sm:$0xff]   ;;  %392 = vmatprep.subr.bf16.mxu1 %v439_v10  ;;  %v442_v14 = vld [vmem:[%s599_s3 + $0x30] sm:$0xff]   ;;  %v430_v16 = vld [vmem:[%s598_s1 + $0x24] ss:$8 sps:$4 sm:$0xff]  }
   0x6   :  { %v429_v12 = vld [vmem:[%s598_s1 + $0x30] ss:$8 sps:$4 sm:$0xff]   ;;  %393 = vmatpush3.bf16.msra.mxu1 %v440_v11  ;;  %v432_v17 = vld [vmem:[%s598_s1 + $0x20] ss:$8 sps:$4 sm:$0xff]   ;;  %v433_v20 = vld [vmem:[%s598_s1 + $0x14] ss:$8 sps:$4 sm:$0xff]  }
   0x7   :  { %135 = vmatpush1.bf16.msra.mxu0 %v420_v4  ;;  %394 = vmatprep.subr.bf16.mxu1 %v441_v13  ;;  %v444_v18 = vld [vmem:[%s599_s3 + $0x28] sm:$0xff]   ;;  %v445_v19 = vld [vmem:[%s599_s3 + $0x60] sm:$0xff]   ;;  %v435_v21 = vld [vmem:[%s598_s1 + $0x10] ss:$8 sps:$4 sm:$0xff]   ;;  %v44_v37 = vsub.s32 0, %v43_v36  ;;  %v48_v39 = vsub.s32 1, %v43_v36 }
   0x8   :  { %136 = vmatprep.subr.bf16.mxu0 %v421_v5  ;;  %v436_v22 = vld [vmem:[%s598_s1 + $0x4] ss:$8 sps:$4 sm:$0xff]   ;;  %v447_v24 = vld [vmem:[%s599_s3 + $0x58] sm:$0xff]   ;;  %v438_v26 = vld [vmem:[%s598_s1] ss:$8 sps:$4 sm:$0xff]  }
   0x9   :  { %v446_v23 = vld [vmem:[%s599_s3 + $0x20] sm:$0xff]   ;;  %v448_v25 = vld [vmem:[%s599_s3 + $0x18] sm:$0xff]   ;;  %v449_v28 = vld [vmem:[%s599_s3 + $0x50] sm:$0xff]  }
   0xa   :  { %395 = vmatpush3.bf16.msra.mxu1 %v442_v14  ;;  %v22_v27 = vld [vmem:[%s600_s0] sm:$0xf]  ;;  %v450_v30 = vld [vmem:[%s599_s3 + $0x10] sm:$0xff]   ;;  %v451_v31 = vld [vmem:[%s599_s3 + $0x48] sm:$0xff]  }
   0xb   :  { %137 = vmatpush1.bf16.msra.mxu0 %v423_v6  ;;  %396 = vmatprep.subr.bf16.mxu1 %v443_v15  ;;  %v23_v29 = vpack.c.bf16 %v22_v27, %v22_v27  ;;  %v452_v32 = vld [vmem:[%s599_s3 + $0x8] sm:$0xff]   ;;  %v453_v33 = vld [vmem:[%s599_s3 + $0x40] sm:$0xff]  }
   0xc   :  { %138 = vmatprep.subr.bf16.mxu0 %v424_v7  ;;  %v454_v34 = vld [vmem:[%s599_s3] sm:$0xff]  }
   0xd   :  { %v40_v38 = vld [vmem:[%s601_s2] sm:$0x3] }
   0xe   :  { %397 = vmatpush3.bf16.msra.mxu1 %v444_v18  ;;  %v45_v40 = vrot.slane %v40_v38, %v44_v37  ;;  %v49_v41 = vrot.slane %v40_v38, %v48_v39 }
   0xf   :  { %139 = vmatpush1.bf16.msra.mxu0 %v426_v8  ;;  %398 = vmatprep.subr.bf16.mxu1 %v445_v19 }
  0x10   :  { %140 = vmatprep.subr.bf16.mxu0 %v427_v9 }
  0x12   :  { %399 = vmatpush3.bf16.msra.mxu1 %v446_v23 }
  0x13   :  { %141 = vmatpush1.bf16.msra.mxu0 %v429_v12  ;;  %400 = vmatprep.subr.bf16.mxu1 %v447_v24 }
  0x14   :  { %142 = vmatprep.subr.bf16.mxu0 %v430_v16 }
  0x16   :  { %401 = vmatpush3.bf16.msra.mxu1 %v448_v25 }
  0x17   :  { %143 = vmatpush1.bf16.msra.mxu0 %v432_v17  ;;  %402 = vmatprep.subr.bf16.mxu1 %v449_v28 }
  0x18   :  { %144 = vmatprep.subr.bf16.mxu0 %v433_v20 }
  0x1a   :  { %403 = vmatpush3.bf16.msra.mxu1 %v450_v30 }
  0x1b   :  { %145 = vmatpush1.bf16.msra.mxu0 %v435_v21  ;;  %404 = vmatprep.subr.bf16.mxu1 %v451_v31 }
  0x1c   :  { %146 = vmatprep.subr.bf16.mxu0 %v436_v22 }
  0x1e   :  { %405 = vmatpush3.bf16.msra.mxu1 %v452_v32 }
  0x1f   :  { %147 = vmatpush1.bf16.msra.mxu0 %v438_v26  ;;  %406 = vmatprep.subr.bf16.mxu1 %v453_v33 }
  0x22   :  { %165 = vmatmul.mubr.bf16.vlgmr.msra.gmra.mxu0 %v23_v29  ;;  %407 = vmatpush3.bf16.msra.mxu1 %v454_v34 }
  0xe2   :  { %v166_v42 = vpop.f32.mrf.mxu0 }
  0xe3   :  { %v167_v43 = vadd.f32 %v166_v42, %v45_v40 }
  0xe4   :  { %v168_v44 = vpop.f32.mrf.mxu0 }
  0xe5   :  { %v169_v45 = vadd.f32 %v168_v44, %v49_v41  ;;  %v173_v46 = vmax.f32 %v167_v43, 0.0 }
  0xe6   :  { %v170_v47 = vpop.f32.mrf.mxu0 }
  0xe7   :  { %v174_v48 = vmax.f32 %v169_v45, 0.0  ;;  %v175_v51 = vpack.c.bf16 %v173_v46, %v173_v46 }
  0xe8   :  { %v171_v49 = vpop.f32.mrf.mxu0 }
  0xe9   :  { %v176_v50 = vpack.c.bf16 %v174_v48, %v174_v48 }
  0xeb   :  { %339 = vmatprep.mubr.bf16.mxu1 %v176_v50 }
  0xec   :  { %340 = vmatmul.mubr.bf16.vlgmr.msra.gmra.mxu1 %v175_v51 }
 0x1ac   :  { %v408_v52 = vpop.f32.mrf.mxu1 }
 0x1ae   :  { %v409_v54 = vpop.f32.mrf.mxu1 }
 0x1af   :  { %v410_v55 = vadd.f32 %v409_v54, %v408_v52 }
 0x1b0   :  { %v411_v56 = vpop.f32.mrf.mxu1 }
 0x1b1   :  { %v342_v57 = vadd.f32 %v410_v55, %v210_v53 }
 0x1b2   :  { %v412_v58 = vpop.f32.mrf.mxu1 }
 0x1b3   :  { %v391_v59 = vmul.f32 -1.442695, %v342_v57 }
 0x1b5   :  { %455 = vpow2.f32 %v391_v59 }
 0x1c2   :  { %v456_v60 = vpop.eup %455 }
 0x1c3   :  { %v350_v61 = vadd.f32 1.0, %v456_v60 }
 0x1c5   :  { %457 = vrcp.f32 %v350_v61 }
 0x1d2   :  { %v458_v62 = vpop.eup %457 }
 0x1d3   :  { %354 = vst.msk [vmem:[%s603_s5] sm:$0xf] %vm353_vm0, %v458_v62 }

</bundles_post_ra>
